<compile_context>
chip_gen: v7x
topology: tpu7x:2x2x1
jax: 0.10.0
libtpu: 0.0.40
codegen_flags: <defaults>
</compile_context>

<pallas_src>
import jax
import jax.numpy as jnp
from jax.experimental import pallas as pl
from jax.experimental.pallas import tpu as pltpu

_EPS = 1e-5


def _ln_withbias_kernel(x_ref, w_ref, b_ref, o_ref):
    x = x_ref[...].astype(jnp.float32)                    # (1, C, T)
    inv_c = 1.0 / x.shape[1]
    # Single-pass moments: one sublane-reduction pass instead of two dependent
    # ones.  var = E[x^2] - mu^2 can suffer cancellation for huge-magnitude
    # activations, so clamp at 0 (inputs here are activation-scale).
    s1 = jnp.sum(x, axis=1, keepdims=True)                # (1, 1, T)
    s2 = jnp.sum(x * x, axis=1, keepdims=True)            # (1, 1, T)
    mu = s1 * inv_c
    var = jnp.maximum(s2 * inv_c - mu * mu, 0.0)
    inv = jax.lax.rsqrt(var + _EPS)                       # EUP op, ~free slot
    w = w_ref[...].astype(jnp.float32)                    # (1, C, 1)
    b = b_ref[...].astype(jnp.float32)                    # (1, C, 1)
    o_ref[...] = (((x - mu) * inv) * w + b).astype(o_ref.dtype)


def _ln_biasfree_kernel(x_ref, w_ref, o_ref):
    x = x_ref[...].astype(jnp.float32)                    # (1, C, T)
    inv_c = 1.0 / x.shape[1]
    s1 = jnp.sum(x, axis=1, keepdims=True)
    s2 = jnp.sum(x * x, axis=1, keepdims=True)
    mu = s1 * inv_c
    var = jnp.maximum(s2 * inv_c - mu * mu, 0.0)
    inv = jax.lax.rsqrt(var + _EPS)
    w = w_ref[...].astype(jnp.float32)
    # NOTE: the BiasFree variant intentionally does NOT subtract the mean from
    # x in the output (mean is only used inside the variance) -- this matches
    # the PyTorch reference (x / sqrt(var + eps) * weight).  Do not "fix" this.
    o_ref[...] = ((x * inv) * w).astype(o_ref.dtype)


def _choose_tile_hw(hw, c, itemsize, batch):
    """Lane-axis tile: a multiple of 128 (or the full HW extent), sized to
    ~4 MiB per input tile so double-buffered in+out (~16 MiB) stays well under
    the 32 MiB scoped-VMEM default on every generation.
    """
    if hw <= 128:
        return hw
    target_bytes = 4 << 20
    t = (target_bytes // max(1, c * itemsize)) // 128 * 128
    t = max(128, min(t, hw))
    if t >= hw:
        t = hw
        # On single-batch inputs keep >= 2 grid steps so both v7x TensorCores
        # (and the DMA pipeline) get work.
        if batch == 1 and hw >= 256:
            t = max(128, (hw // 2) // 128 * 128)
    return t


def _layernorm_channels(x3, weight, bias, ln_type):
    """x3: (B, C, HW); normalize each (b, :, p) column over the C axis."""
    B, C, HW = x3.shape
    tile_hw = _choose_tile_hw(HW, C, x3.dtype.itemsize, B)
    grid = (B, pl.cdiv(HW, tile_hw))      # partial tail blocks handled by Pallas;
                                          # per-column stats are unaffected by lane padding.

    x_spec = pl.BlockSpec((1, C, tile_hw), lambda b, j: (b, 0, j))
    p_spec = pl.BlockSpec((1, C, 1), lambda b, j: (0, 0, 0))   # resident params (same block
                                                               # every step -> no re-DMA)
    o_spec = pl.BlockSpec((1, C, tile_hw), lambda b, j: (b, 0, j))

    cparams = pltpu.CompilerParams(
        dimension_semantics=("parallel", "parallel"))

    w3 = weight.reshape(1, C, 1)
    if ln_type == "BiasFree":
        return pl.pallas_call(
            _ln_biasfree_kernel,
            out_shape=jax.ShapeDtypeStruct((B, C, HW), x3.dtype),
            grid=grid,
            in_specs=[x_spec, p_spec],
            out_specs=o_spec,
            compiler_params=cparams,
        )(x3, w3)

    b3 = bias.reshape(1, C, 1)
    return pl.pallas_call(
        _ln_withbias_kernel,
        out_shape=jax.ShapeDtypeStruct((B, C, HW), x3.dtype),
        grid=grid,
        in_specs=[x_spec, p_spec, p_spec],
        out_specs=o_spec,
        compiler_params=cparams,
    )(x3, w3, b3)


def layer_norm(x_nchw, weight, bias=None, ln_type="WithBias"):
    """Equivalent of LayerNorm(dim, LayerNorm_type).forward on NCHW input."""
    B, C, H, W = x_nchw.shape
    x3 = x_nchw.reshape(B, C, H * W)      # pure view; no transpose, no extra HBM pass
    y3 = _layernorm_channels(x3, weight, bias, ln_type)
    return y3.reshape(B, C, H, W)


def _ref_layer_norm(x_nchw, weight, bias, ln_type):
    """Pure-JAX reference with the exact PyTorch (to_3d -> LN -> to_4d) math."""
    B, C, H, W = x_nchw.shape
    x = jnp.transpose(x_nchw, (0, 2, 3, 1)).reshape(B, H * W, C)
    mu = jnp.mean(x, axis=-1, keepdims=True)
    var = jnp.mean((x - mu) ** 2, axis=-1, keepdims=True)   # unbiased=False
    if ln_type == "BiasFree":
        y = x / jnp.sqrt(var + _EPS) * weight
    else:
        y = (x - mu) / jnp.sqrt(var + _EPS) * weight + bias
    return jnp.transpose(y.reshape(B, H, W, C), (0, 3, 1, 2))


if __name__ == "__main__":
    B, C, H, W = 2, 32, 16, 16      # dim = 32
    kx, kw, kb = jax.random.split(jax.random.PRNGKey(0), 3)
    x = jax.random.normal(kx, (B, C, H, W), dtype=jnp.float32)

    # Module init is torch.ones / torch.zeros; use non-trivial deterministic
    # values here so the scale/shift paths are actually exercised.
    weight = 1.0 + 0.1 * jax.random.normal(kw, (C,), dtype=jnp.float32)
    bias = 0.1 * jax.random.normal(kb, (C,), dtype=jnp.float32)

    # WithBias variant (default branch of LayerNorm when type != 'BiasFree')
    y_wb = layer_norm(x, weight, bias, ln_type="WithBias")
    jax.block_until_ready(y_wb)
    ref_wb = _ref_layer_norm(x, weight, bias, "WithBias")
    assert jnp.allclose(y_wb, ref_wb, atol=1e-4, rtol=1e-4)

    # BiasFree variant
    y_bf = layer_norm(x, weight, None, ln_type="BiasFree")
    jax.block_until_ready(y_bf)
    ref_bf = _ref_layer_norm(x, weight, bias, "BiasFree")
    assert jnp.allclose(y_bf, ref_bf, atol=1e-4, rtol=1e-4)

    print("KERNEL_OK")
</pallas_src>

<mosaic_0001>
module attributes {stable_mosaic.version = 11 : i64} {
  func.func @_ln_withbias_kernel(%arg0: i32, %arg1: i32, %arg2: memref<1x32x256xf32, #tpu.memory_space<vmem>>, %arg3: memref<1x32x1xf32, #tpu.memory_space<vmem>>, %arg4: memref<1x32x1xf32, #tpu.memory_space<vmem>>, %arg5: memref<1x32x256xf32, #tpu.memory_space<vmem>>) attributes {dimension_semantics = [#tpu.dimension_semantics<parallel>, #tpu.dimension_semantics<parallel>], iteration_bounds = array<i64: 2, 1>, scalar_prefetch = 0 : i64, scratch_operands = 0 : i64, tpu.core_type = #tpu.core_type<tc>, window_params = [{transform_indices = @transform_0, window_bounds = array<i64: 1, 32, 256>}, {pipeline_mode = #tpu.pipeline_mode<synchronous>, transform_indices = @transform_1, window_bounds = array<i64: 1, 32, 1>}, {pipeline_mode = #tpu.pipeline_mode<synchronous>, transform_indices = @transform_2, window_bounds = array<i64: 1, 32, 1>}, {transform_indices = @transform_3, window_bounds = array<i64: 1, 32, 256>}]} {
    %c0 = arith.constant 0 : index
    %c0_0 = arith.constant 0 : index
    %c0_1 = arith.constant 0 : index
    %0 = vector.load %arg2[%c0, %c0_0, %c0_1] : memref<1x32x256xf32, #tpu.memory_space<vmem>>, vector<1x32x256xf32>
    %cst = arith.constant dense<0.000000e+00> : vector<1x256xf32>
    %1 = vector.multi_reduction <add>, %0, %cst [1] : vector<1x32x256xf32> to vector<1x256xf32>
    %2 = vector.shape_cast %1 : vector<1x256xf32> to vector<1x1x256xf32>
    %3 = arith.mulf %0, %0 : vector<1x32x256xf32>
    %cst_2 = arith.constant dense<0.000000e+00> : vector<1x256xf32>
    %4 = vector.multi_reduction <add>, %3, %cst_2 [1] : vector<1x32x256xf32> to vector<1x256xf32>
    %5 = vector.shape_cast %4 : vector<1x256xf32> to vector<1x1x256xf32>
    %cst_3 = arith.constant 3.125000e-02 : f32
    %6 = vector.broadcast %cst_3 : f32 to vector<1x1x256xf32>
    %7 = arith.mulf %2, %6 : vector<1x1x256xf32>
    %cst_4 = arith.constant 3.125000e-02 : f32
    %8 = vector.broadcast %cst_4 : f32 to vector<1x1x256xf32>
    %9 = arith.mulf %5, %8 : vector<1x1x256xf32>
    %10 = arith.mulf %7, %7 : vector<1x1x256xf32>
    %11 = arith.subf %9, %10 : vector<1x1x256xf32>
    %cst_5 = arith.constant 0.000000e+00 : f32
    %12 = vector.broadcast %cst_5 : f32 to vector<1x1x256xf32>
    %13 = arith.maximumf %11, %12 : vector<1x1x256xf32>
    %cst_6 = arith.constant 9.99999974E-6 : f32
    %14 = vector.broadcast %cst_6 : f32 to vector<1x1x256xf32>
    %15 = arith.addf %13, %14 : vector<1x1x256xf32>
    %16 = math.rsqrt %15 : vector<1x1x256xf32>
    %c0_7 = arith.constant 0 : index
    %c0_8 = arith.constant 0 : index
    %c0_9 = arith.constant 0 : index
    %17 = vector.load %arg3[%c0_7, %c0_8, %c0_9] : memref<1x32x1xf32, #tpu.memory_space<vmem>>, vector<1x32x1xf32>
    %c0_10 = arith.constant 0 : index
    %c0_11 = arith.constant 0 : index
    %c0_12 = arith.constant 0 : index
    %18 = vector.load %arg4[%c0_10, %c0_11, %c0_12] : memref<1x32x1xf32, #tpu.memory_space<vmem>>, vector<1x32x1xf32>
    %19 = vector.broadcast %7 : vector<1x1x256xf32> to vector<1x32x256xf32>
    %20 = arith.subf %0, %19 : vector<1x32x256xf32>
    %21 = vector.broadcast %16 : vector<1x1x256xf32> to vector<1x32x256xf32>
    %22 = arith.mulf %20, %21 : vector<1x32x256xf32>
    %23 = vector.broadcast %17 : vector<1x32x1xf32> to vector<1x32x256xf32>
    %24 = arith.mulf %22, %23 : vector<1x32x256xf32>
    %25 = vector.broadcast %18 : vector<1x32x1xf32> to vector<1x32x256xf32>
    %26 = arith.addf %24, %25 : vector<1x32x256xf32>
    %c0_13 = arith.constant 0 : index
    %c0_14 = arith.constant 0 : index
    %c0_15 = arith.constant 0 : index
    %27 = vector.load %arg5[%c0_13, %c0_14, %c0_15] : memref<1x32x256xf32, #tpu.memory_space<vmem>>, vector<1x32x256xf32>
    tpu.vector_store %arg5[%c0_13, %c0_14, %c0_15], %26 {strides = array<i32>} : memref<1x32x256xf32, #tpu.memory_space<vmem>>, vector<1x32x256xf32>,
    return
  }
  func.func @transform_0(%arg0: i32, %arg1: i32) -> (i32, i32, i32) {
    %c0_i32 = arith.constant 0 : i32
    %c0_i32_0 = arith.constant 0 : i32
    return %arg0, %c0_i32, %arg1 : i32, i32, i32
  }
  func.func @transform_1(%arg0: i32, %arg1: i32) -> (i32, i32, i32) {
    %c0_i32 = arith.constant 0 : i32
    %c0_i32_0 = arith.constant 0 : i32
    %c0_i32_1 = arith.constant 0 : i32
    %c0_i32_2 = arith.constant 0 : i32
    return %c0_i32, %c0_i32_0, %c0_i32_1 : i32, i32, i32
  }
  func.func @transform_2(%arg0: i32, %arg1: i32) -> (i32, i32, i32) {
    %c0_i32 = arith.constant 0 : i32
    %c0_i32_0 = arith.constant 0 : i32
    %c0_i32_1 = arith.constant 0 : i32
    %c0_i32_2 = arith.constant 0 : i32
    return %c0_i32, %c0_i32_0, %c0_i32_1 : i32, i32, i32
  }
  func.func @transform_3(%arg0: i32, %arg1: i32) -> (i32, i32, i32) {
    %c0_i32 = arith.constant 0 : i32
    %c0_i32_0 = arith.constant 0 : i32
    return %arg0, %c0_i32, %arg1 : i32, i32, i32
  }
}

</mosaic_0001>

<bundles_post_ra>
// kernel: tpu_custom_call.1
= control target key start
LH: loop header
LB: loop body
LE: loop exit
PB: predicated region body
PF: predicated region fallthrough
CT: control target
= control target key end

     0   :  { %8 = vsyncpa [#allocation3], 0  ;;  %s958_s0 = inlined_call_operand.hbm [shape: f32[2,32,256], index: 0, kind: input, shape index: {}]   ;;  %s959_s1 = inlined_call_operand.vmem [shape: f32[1,32,1], index: 1, kind: input, shape index: {}]   ;;  %s960_s2 = inlined_call_operand.vmem [shape: f32[1,32,1], index: 2, kind: input, shape index: {}]   ;;  %s961_s3 = inlined_call_operand.hbm [shape: f32[2,32,256], index: 3, kind: output, shape index: {}]  }
   0x1   :  { %10 = vsyncpa [#allocation3 + $0x1], 0 }
   0x2   :  { %11 = vsyncpa [#allocation4], 0 }
   0x3   :  { %13 = vsyncpa [#allocation4 + $0x1], 0  ;;  %s697_s12 = smov 0   ;;  %s699_s13 = smov 0  }
   0x4   :  { %s701_s14 = smov 0   ;;  %s703_s15 = smov 0  }
   0x5   :  { %s705_s16 = smov 0   ;;  %s707_s17 = smov 0  }
   0x6 LB: > { %s466_s18 = sadd.s32 4294967295, %s668_s17   ;;  %s467_s19 = sadd.s32 4294967294, %s668_s17   ;;  %s668_s17 = sphi %s707_s17, %s19_s17   ;;  %s664_s16 = sphi %s705_s16, %s976_s16   ;;  %s660_s15 = sphi %s703_s15, %s975_s15   ;;  %s656_s14 = sphi %s701_s14, %s974_s14   ;;  %s652_s13 = sphi %s699_s13, %s973_s13   ;;  %s648_s12 = sphi %s697_s12, %s972_s12  }
   0x7   : > { %s31_s20 = sadd.s32 1, %s664_s16  ;;  %s40_s21 = sadd.s32 1, %s656_s14 }
   0x8   : > { %p33_p0 = scmp.ge.s32.totalorder %s31_s20, 2  ;;  %p47_p1 = scmp.ne.s32.totalorder %s656_s14, %s652_s13 }
   0x9   : > { %p48_p2 = scmp.eq.s32.totalorder %s668_s17, 0  ;;  %p53_p3 = scmp.ne.s32.totalorder %s652_s13, %s648_s12 }
   0xa   : > { %s978_s20 = smov (%p33_p0, %s31_s20), 0  ;;  %p54_p5 = scmp.eq.s32.totalorder %s466_s18, 0 }
   0xb   : > { %p738_p4 = por %p48_p2, %p47_p1  ;;  %s35_s23 = ssub.s32 %s664_s16, %s978_s20 }
   0xc   : > { %p121_p6 = scmp.eq.s32.totalorder %s466_s18, 1  ;;  %p38_p7 = scmp.eq.s32.totalorder %s35_s23, 0 }
   0xd   : > { %p744_p8 = por %p54_p5, %p53_p3  ;;  %p127_p10 = scmp.eq.s32.totalorder %s467_s19, 1 }
   0xe   : > { %p748_p9 = por %p121_p6, %p47_p1  ;;  %p495_p13 = scmp.lt.s32.totalorder %s668_s17, 2 }
   0xf   : > { %s753_s26 = scalar_select %p38_p7, %s656_s14, %s40_s21  }
  0x10   : > { %s965_s25 = scalar_select %p748_p9, 1, 0 }
  0x11   : > { %p755_p11 = por %p127_p10, %p53_p3  ;;  %s153_s28 = sand.u32 1, %s656_s14  }
  0x12   : > { %s470_s29 = sshll.u32 %s153_s28, 6  ;;  %s481_s30 = sshll.u32 %s664_s16, 10 }
  0x13   : > { %s966_s27 = scalar_select %p755_p11, 1, 0 }
  0x14   : > { %s766_s6 = scalar_lea.hbm %s958_s0, %s481_s30  ;;  %s157_s7 = scalar_lea.vmem [#allocation2], %s470_s29 }
  0x15   : > { %s166_s8 = sshll.u32 %s157_s7, 4  ;;  %p772_p0 = pnand %p495_p13, %p738_p4  ;;  %s768_s8 = int_to_ptr.vmem [resolvable:$true] %s166_s8 }
  0x16   : > { %s777_s10 = scalar_lea.sflag [#allocation3], %s153_s28  ;;  %s556_s11 = scalar_lea.hbm %s766_s6, 1024 }
  0x17   : > { %p557_p2 = scmp.ne.s32.totalorder %s766_s6, %s556_s11  ;;  %p558_p3 = pneg %p772_p0 }
  0x18   : > { %s561_s21 = scalar_lea.hbm %s958_s0, 2048  ;;  %p562_p4 = scmp.lt.u32.totalorder %s766_s6, %s958_s0 }
  0x19   : > { %p559_p5 = pnand %p558_p3, %p557_p2  ;;  %p563_p7 = scmp.lt.u32.totalorder %s561_s21, %s556_s11 }
  0x1a   : > { %p565_p13 = scmp.lt.u32.totalorder %s556_s11, %s766_s6 }
  0x1b   : > { %p560_p6 = pneg %p559_p5  ;;  %p564_p10 = por %p563_p7, %p562_p4 }
  0x1d   : > { %p566_p12 = por %p565_p13, %p564_p10 }
  0x1f   : > { %p567_p1 = pnand %p566_p12, %p560_p6 }
  0x21   : > { %570 = shalt.err (!%p567_p1)
}
  0x22   : > { %s571_s28 = scalar_lea.vmem %s768_s8, 1024  ;;  %s670_s29 = smov [#allocation2]  }
  0x23   : > { %p572_p2 = scmp.ne.s32.totalorder %s768_s8, %s571_s28  ;;  %s576_s30 = sshll.u32 %s670_s29, 4  ;;  %s577_s30 = int_to_ptr.vmem [resolvable:$false] %s576_s30 }
  0x24   : > { %s578_s4 = scalar_lea.vmem %s577_s30, 2048  ;;  %p579_p9 = scmp.lt.s32.totalorder %s768_s8, %s577_s30 }
  0x25   : > { %p574_p5 = pnand %p572_p2, %p558_p3  ;;  %p580_p4 = scmp.lt.s32.totalorder %s578_s4, %s571_s28 }
  0x27   : > { %p575_p11 = pneg %p574_p5  ;;  %p581_p7 = por %p580_p4, %p579_p9 }
  0x29   : > { %p582_p10 = pnand %p581_p7, %p575_p11 }
  0x2b   : > { %585 = shalt.err (!%p582_p10)
}
  0x2c   : > { %s671_s5 = smov 256   ;;  %s672_s7 = smov 16  }
  0x2d   : > { %490 = dma.hbm_to_vmem [thread:$0]  (!%p772_p0), %s766_s6, 1024, %s768_s8, %s777_s10, %s671_s5, %s671_s5, %s672_s7  }
  0x2e   : > { %p174_p12 = scmp.lt.s32.totalorder %s668_s17, 3  ;;  %p968_p1 = scmp.ge.s32.totalorder %s668_s17, 1 }
  0x30   : > { %p175_p3 = pnand %p968_p1, %p174_p12 }
  0x31   : > { %s809_s11 = sand.u32 (!%p175_p3), 1, %s652_s13  }
  0x32   : > { %178 = sbr.rel (%p175_p3) target bundleno = 218 (0xda), region = 32  ;;  %s474_s18 = sshll.u32 (!%p175_p3), %s809_s11, 6 }
  0x33   : > { %s181_s19 = scalar_lea.sflag (!%p175_p3), [#allocation3], %s809_s11  ;;  %s815_s21 = scalar_lea.vmem (!%p175_p3), [#allocation2], %s474_s18 }
  0x39   : > { %639 = dma.done.wait (%p744_p8), %s181_s19, 1024  }
  0x3a   : > { %641 = vsyncadd (%p744_p8), %s181_s19, 4294966272  ;;  %v673_v0 = vmov 0   ;;  %v277_v1 = vld [vmem:[%s959_s1 + $0x10] sm:$0xff]  ;;  %v275_v2 = vld [vmem:[%s959_s1] sm:$0xff]  ;;  %s482_s10 = sshll.u32 %s660_s15, 10  ;;  %s364_s23 = scalar_lea.sflag [#allocation4], %s809_s11 }
  0x3b   : > { %551 = vset.pattern.permute.xlu1 %v673_v0  ;;  %550 = vset.pattern.permute.xlu0 %v673_v0  ;;  %v278_v3 = vld [vmem:[%s959_s1 + $0x18] sm:$0xff]  ;;  %v276_v4 = vld [vmem:[%s959_s1 + $0x8] sm:$0xff]  ;;  %v279_v6 = vld [vmem:[%s960_s2] sm:$0xff]  ;;  %s909_s15 = scalar_lea.hbm %s961_s3, %s482_s10  ;;  %p969_p9 = scmp.ne.s32.totalorder %s965_s25, 0 }
  0x3c   : > { %311 = vperm.xlu1 %551, %v277_v1   ;;  %301 = vperm.xlu0 %550, %v275_v2   ;;  %v280_v5 = vld [vmem:[%s960_s2 + $0x8] sm:$0xff]  ;;  %v282_v7 = vld [vmem:[%s960_s2 + $0x18] sm:$0xff]  ;;  %v281_v8 = vld [vmem:[%s960_s2 + $0x10] sm:$0xff]  ;;  %s674_s28 = smov [#allocation5]  }
  0x3d   : > { %v846_v9 = vld [vmem:[%s815_s21] sm:$0xff]  ;;  %v849_v10 = vld [vmem:[%s815_s21 + $0x10] sm:$0xff]  ;;  %v852_v11 = vld [vmem:[%s815_s21 + $0x8] sm:$0xff]  ;;  %s590_s29 = sshll.u32 %s674_s28, 4  ;;  %s591_s29 = int_to_ptr.vmem [resolvable:$false] %s590_s29 }
  0x3e   : > { %v855_v12 = vld [vmem:[%s815_s21 + $0x18] sm:$0xff]  ;;  %v217_v13 = vadd.f32 %v849_v10, %v846_v9  ;;  %v235_v14 = vmul.f32 %v846_v9, %v846_v9  ;;  %v237_v15 = vmul.f32 %v849_v10, %v849_v10  ;;  %v864_v16 = vld [vmem:[%s815_s21 + $0x20] sm:$0xff]  ;;  %v236_v18 = vmul.f32 %v852_v11, %v852_v11  ;;  %v873_v20 = vld [vmem:[%s815_s21 + $0x28] sm:$0xff]  ;;  %s592_s30 = scalar_lea.vmem %s591_s29, 2048 }
  0x3f   : > { %v226_v17 = vadd.f32 %v855_v12, %v852_v11  ;;  %v238_v19 = vmul.f32 %v855_v12, %v855_v12  ;;  %v239_v22 = vmul.f32 %v864_v16, %v864_v16  ;;  %v879_v24 = vld [vmem:[%s815_s21 + $0x30] sm:$0xff]  ;;  %v240_v26 = vmul.f32 %v873_v20, %v873_v20  ;;  %v885_v28 = vld [vmem:[%s815_s21 + $0x38] sm:$0xff]  ;;  %s206_s21 = scalar_lea.vmem [#allocation5], %s474_s18 }
  0x40   : > { %316 = vperm.xlu1 %551, %v278_v3   ;;  %306 = vperm.xlu0 %550, %v276_v4   ;;  %v218_v21 = vadd.f32 %v217_v13, %v864_v16  ;;  %v243_v23 = vadd.f32 %v237_v15, %v235_v14  ;;  %v241_v30 = vmul.f32 %v879_v24, %v879_v24  ;;  %s379_s9 = sshll.u32 %s206_s21, 4  ;;  %s904_s9 = int_to_ptr.vmem [resolvable:$true] %s379_s9 }
  0x41   : > { %v227_v25 = vadd.f32 %v226_v17, %v873_v20  ;;  %v252_v27 = vadd.f32 %v238_v19, %v236_v18  ;;  %v242_v33 = vmul.f32 %v885_v28, %v885_v28  ;;  %s586_s24 = scalar_lea.vmem %s904_s9, 1024  ;;  %p593_p6 = scmp.lt.s32.totalorder %s904_s9, %s591_s29 }
  0x42   : > { %v219_v29 = vadd.f32 %v218_v21, %v879_v24  ;;  %v244_v31 = vadd.f32 %v243_v23, %v239_v22  ;;  %p587_p8 = scmp.ne.s32.totalorder %s904_s9, %s586_s24  ;;  %p594_p13 = scmp.lt.s32.totalorder %s592_s30, %s586_s24 }
  0x43   : > { %v228_v32 = vadd.f32 %v227_v25, %v885_v28  ;;  %v253_v34 = vadd.f32 %v252_v27, %v240_v26 }
  0x44   : > { %334 = vperm.xlu1 %551, %v280_v5   ;;  %329 = vperm.xlu0 %550, %v279_v6   ;;  %v220_v35 = vrot.slane %v219_v29, 4  ;;  %v245_v36 = vadd.f32 %v244_v31, %v241_v30  ;;  %p588_p11 = pnand %p587_p8, %p969_p9  ;;  %p595_p2 = por %p594_p13, %p593_p6 }
  0x45   : > { %v229_v37 = vrot.slane %v228_v32, 4  ;;  %v254_v38 = vadd.f32 %v253_v34, %v242_v33 }
  0x46   : > { %v221_v39 = vadd.f32 %v220_v35, %v219_v29  ;;  %v246_v40 = vrot.slane %v245_v36, 4  ;;  %p589_p0 = pneg %p588_p11 }
  0x47   : > { %v230_v41 = vadd.f32 %v229_v37, %v228_v32  ;;  %v255_v42 = vrot.slane %v254_v38, 4 }
  0x48   : > { %344 = vperm.xlu1 %551, %v282_v7   ;;  %339 = vperm.xlu0 %550, %v281_v8   ;;  %v222_v43 = vrot.slane %v221_v39, 2  ;;  %v247_v44 = vadd.f32 %v246_v40, %v245_v36  ;;  %p596_p5 = pnand %p595_p2, %p589_p0 }
  0x49   : > { %v231_v45 = vrot.slane %v230_v41, 2  ;;  %v256_v46 = vadd.f32 %v255_v42, %v254_v38 }
  0x4a   : > { %v223_v47 = vadd.f32 %v222_v43, %v221_v39  ;;  %v248_v48 = vrot.slane %v247_v44, 2 }
  0x4b   : > { %v232_v49 = vadd.f32 %v231_v45, %v230_v41  ;;  %v257_v50 = vrot.slane %v256_v46, 2 }
  0x4c   : > { %v224_v51 = vrot.slane %v223_v47, 1  ;;  %v249_v52 = vadd.f32 %v248_v48, %v247_v44 }
  0x4d   : > { %v233_v53 = vrot.slane %v232_v49, 1  ;;  %v258_v54 = vadd.f32 %v257_v50, %v256_v46 }
  0x4e   : > { %v225_v55 = vadd.f32 %v224_v51, %v223_v47  ;;  %v250_v56 = vrot.slane %v249_v52, 1 }
  0x4f   : > { %v234_v57 = vadd.f32 %v233_v53, %v232_v49  ;;  %v259_v58 = vrot.slane %v258_v54, 1 }
  0x50   : > { %v251_v59 = vadd.f32 %v250_v56, %v249_v52  ;;  %v261_v60 = vmul.f32 0.03125, %v225_v55 }
  0x51   : > { %v260_v61 = vadd.f32 %v259_v58, %v258_v54  ;;  %v262_v62 = vmul.f32 0.03125, %v234_v57 }
  0x52   : > { %v263_v63 = vmul.f32 0.03125, %v251_v59  ;;  %v265_v0 = vmul.f32 %v261_v60, %v261_v60  ;;  %v283_v14 = vsub.f32 %v846_v9, %v261_v60  ;;  %v285_v17 = vsub.f32 %v849_v10, %v261_v60 }
  0x53   : > { %v264_v1 = vmul.f32 0.03125, %v260_v61  ;;  %v266_v2 = vmul.f32 %v262_v62, %v262_v62  ;;  %v284_v15 = vsub.f32 %v852_v11, %v262_v62  ;;  %v286_v18 = vsub.f32 %v855_v12, %v262_v62 }
  0x54   : > { %v267_v3 = vsub.f32 %v263_v63, %v265_v0  ;;  %v287_v23 = vsub.f32 %v864_v16, %v261_v60  ;;  %v288_v25 = vsub.f32 %v873_v20, %v262_v62  ;;  %v289_v26 = vsub.f32 %v879_v24, %v261_v60 }
  0x55   : > { %v268_v4 = vsub.f32 %v264_v1, %v266_v2  ;;  %v290_v27 = vsub.f32 %v885_v28, %v262_v62 }
  0x56   : > { %v269_v5 = vmax.f32 %v267_v3, 0.0 }
  0x57   : > { %v270_v6 = vmax.f32 %v268_v4, 0.0 }
  0x58   : > { %v271_v7 = vadd.f32 1e-05, %v269_v5 }
  0x59   : > { %v272_v8 = vadd.f32 1e-05, %v270_v6 }
  0x5a   : > { %552 = vrsqrt.f32 %v271_v7 }
  0x5b   : > { %554 = vrsqrt.f32 %v272_v8 }
  0x64   : > { %v553_v13 = vpop.eup %552 }
  0x65   : > { %v555_v19 = vpop.eup %554  ;;  %v291_v29 = vmul.f32 %v553_v13, %v283_v14  ;;  %v293_v30 = vmul.f32 %v553_v13, %v285_v17  ;;  %v295_v32 = vmul.f32 %v553_v13, %v287_v23  ;;  %v297_v33 = vmul.f32 %v553_v13, %v289_v26 }
  0x66   : > { %v292_v9 = vmul.f32 %v555_v19, %v284_v15  ;;  %v294_v11 = vmul.f32 %v555_v19, %v286_v18  ;;  %v296_v12 = vmul.f32 %v555_v19, %v288_v25  ;;  %v298_v34 = vmul.f32 %v555_v19, %v290_v27 }
  0xbb   : > { %v312_v21 = vpop.permute.xlu1 %311  ;;  %v302_v22 = vpop.permute.xlu0 %301 }
  0xbc   : > { %v319_v35 = vmul.f32 %v302_v22, %v291_v29  ;;  %v320_v16 = vmul.f32 %v302_v22, %v292_v9  ;;  %v323_v41 = vmul.f32 %v312_v21, %v295_v32  ;;  %v324_v42 = vmul.f32 %v312_v21, %v296_v12 }
  0xbf   : > { %v317_v31 = vpop.permute.xlu1 %316  ;;  %v307_v10 = vpop.permute.xlu0 %306 }
  0xc0   : > { %v321_v36 = vmul.f32 %v307_v10, %v293_v30  ;;  %v322_v20 = vmul.f32 %v307_v10, %v294_v11  ;;  %v325_v43 = vmul.f32 %v317_v31, %v297_v33  ;;  %v326_v44 = vmul.f32 %v317_v31, %v298_v34 }
  0xc3   : > { %v335_v24 = vpop.permute.xlu1 %334  ;;  %v330_v28 = vpop.permute.xlu0 %329 }
  0xc4   : > { %v349_v37 = vadd.f32 %v335_v24, %v321_v36  ;;  %v350_v38 = vadd.f32 %v335_v24, %v322_v20  ;;  %v347_v39 = vadd.f32 %v330_v28, %v319_v35  ;;  %v348_v40 = vadd.f32 %v330_v28, %v320_v16 }
  0xc6   : > { %357 = vst [vmem:[%s206_s21 + $0x10] sm:$0xff] %v349_v37  ;;  %358 = vst [vmem:[%s206_s21 + $0x18] sm:$0xff] %v350_v38 }
  0xc7   : > { %355 = vst [vmem:[%s206_s21] sm:$0xff] %v347_v39  ;;  %356 = vst [vmem:[%s206_s21 + $0x8] sm:$0xff] %v348_v40  ;;  %v345_v45 = vpop.permute.xlu1 %344  ;;  %v340_v46 = vpop.permute.xlu0 %339 }
  0xc8   : > { %v353_v47 = vadd.f32 %v345_v45, %v325_v43  ;;  %v354_v48 = vadd.f32 %v345_v45, %v326_v44  ;;  %v351_v49 = vadd.f32 %v340_v46, %v323_v41  ;;  %v352_v50 = vadd.f32 %v340_v46, %v324_v42 }
  0xca   : > { %361 = vst [vmem:[%s206_s21 + $0x30] sm:$0xff] %v353_v47  ;;  %362 = vst [vmem:[%s206_s21 + $0x38] sm:$0xff] %v354_v48 }
  0xcb   : > { %359 = vst [vmem:[%s206_s21 + $0x20] sm:$0xff] %v351_v49  ;;  %360 = vst [vmem:[%s206_s21 + $0x28] sm:$0xff] %v352_v50 }
  0xcc   : > { %599 = shalt.err (!%p596_p5)
}
  0xcd   : > { %s600_s4 = scalar_lea.hbm %s909_s15, 1024  ;;  %s604_s19 = scalar_lea.hbm %s961_s3, 2048 }
  0xce   : > { %p601_p4 = scmp.ne.s32.totalorder %s909_s15, %s600_s4  ;;  %p605_p12 = scmp.lt.u32.totalorder %s909_s15, %s961_s3 }
  0xcf   : > { %p606_p1 = scmp.lt.u32.totalorder %s604_s19, %s600_s4  ;;  %p608_p8 = scmp.lt.u32.totalorder %s600_s4, %s909_s15 }
  0xd0   : > { %p602_p7 = pnand %p601_p4, %p969_p9 }
  0xd1   : > { %p607_p3 = por %p606_p1, %p605_p12 }
  0xd2   : > { %p603_p10 = pneg %p602_p7 }
  0xd3   : > { %p609_p11 = por %p608_p8, %p607_p3 }
  0xd5   : > { %p610_p0 = pnand %p609_p11, %p603_p10 }
  0xd7   : > { %613 = shalt.err (!%p610_p0)
}
  0xd8   : > { %s675_s21 = smov 256   ;;  %s676_s10 = smov 16  }
  0xd9   : > { %485 = dma.vmem_to_hbm [thread:$0]  (%p969_p9), %s904_s9, 1024, %s909_s15, %s364_s23, %s675_s21, %s675_s21, %s676_s10  }
  0xda PF: > { %s394_s18 = sand.u32 1, %s648_s12   ;;  %p970_p6 = scmp.ne.s32.totalorder %s966_s27, 0 }
  0xdb   : > { %p971_p13 = scmp.ge.s32.totalorder %s668_s17, 2  ;;  %s395_s22 = scalar_lea.sflag [#allocation4], %s394_s18 }
  0xdd   : > { %p492_p2 = pnand %p971_p13, %p970_p6 }
  0xdf   : > { %643 = dma.done.wait (!%p492_p2), %s395_s22, 1024  }
  0xe0   : > { %645 = vsyncadd (!%p492_p2), %s395_s22, 4294966272  ;;  %s19_s17 = sadd.s32 1, %s668_s17   ;;  %s972_s12 = smov %s652_s13 }
  0xe1   : > { %p16_p5 = scmp.ge.s32.totalorder %s19_s17, 4   ;;  %s973_s13 = smov %s656_s14 }
  0xe2   : > { %s974_s14 = smov %s753_s26  ;;  %s975_s15 = smov %s664_s16 }
  0xe3   : > { %s976_s16 = smov %s978_s20  ;;  %18 = sbr.rel (!%p16_p5) target bundleno = 6 (0x6), region = 77 }
  0xea   :  { %400 = vsyncpa [#allocation3], 1 }
  0xeb   :  { %402 = vsyncpa [#allocation3 + $0x1], 1 }
  0xec   :  { %403 = vsyncpa [#allocation4], 1 }
  0xed   :  { %405 = vsyncpa [#allocation4 + $0x1], 1 }

</bundles_post_ra>
